<compile_context>
chip_gen: v5e
topology: v5e:2x2
jax: 0.10.0
libtpu: 0.0.40
codegen_flags: <defaults>
</compile_context>

<pallas_src>
import jax
import jax.numpy as jnp
from jax.experimental import pallas as pl
from jax.experimental.pallas import tpu as pltpu

# ----------------------------- configuration --------------------------------
B = 2            # batch
C_IN = 4         # state_dim
C_OUT = 8        # out_state_dim
L = 16           # sequence length (number of snake vertices)
N_ADJ = 4
DIL = 1
K = 2 * N_ADJ + 1              # conv kernel size
PAD = N_ADJ * DIL              # circular pad on each side
EPS = 1e-5
N_ELEM = B * L                 # elements per channel for BN stats


# ------------------------------ fused kernel ---------------------------------
def snake_block_kernel(x_ref, w_ref, bias_ref, gamma_ref, beta_ref,
                       o_ref, xcol_ref):
    # ---- in-kernel circular padding + im2col ------------------------------
    # xcol[k*C_IN + c, b*L + l] = x[b, c, (l + k*DIL - PAD) mod L]
    for b in range(B):
        xb = x_ref[b]                                   # (C_IN, L) in VMEM
        for k in range(K):
            r0 = k * C_IN
            s = (k * DIL - PAD) % L                     # static circular shift
            if s == 0:
                xcol_ref[r0:r0 + C_IN, b * L:(b + 1) * L] = xb
            else:
                xcol_ref[r0:r0 + C_IN, b * L:b * L + (L - s)] = xb[:, s:]
                xcol_ref[r0:r0 + C_IN, b * L + (L - s):(b + 1) * L] = xb[:, :s]

    # ---- dilated circular Conv1d as ONE MXU matmul, + bias, ReLU -----------
    acc = jnp.dot(w_ref[...], xcol_ref[...],
                  preferred_element_type=jnp.float32)   # (C_OUT, B*L)
    y = jnp.maximum(acc + bias_ref[...], 0.0)           # ReLU

    # ---- BatchNorm1d (training-mode biased batch statistics), fused --------
    inv_n = 1.0 / float(N_ELEM)
    mean = jnp.sum(y, axis=1, keepdims=True) * inv_n            # (C_OUT, 1)
    var = jnp.sum(y * y, axis=1, keepdims=True) * inv_n - mean * mean
    var = jnp.maximum(var, 0.0)                                 # guard cancellation
    scale = gamma_ref[...] * jax.lax.rsqrt(var + EPS)           # EUP rsqrt
    shift = beta_ref[...] - mean * scale
    o_ref[...] = (y * scale + shift).astype(o_ref.dtype)


# ------------------------------- wrapper --------------------------------------
@jax.jit
def snake_block(x, w, bias, gamma, beta):
    """x: (B, C_IN, L) NCL.  w: (C_OUT, C_IN, K).  Returns (B, C_OUT, L)."""
    # weight flattened so row index = k*C_IN + c  (matches im2col row order)
    w2 = jnp.transpose(w, (0, 2, 1)).reshape(C_OUT, K * C_IN)   # (C_OUT, K*C_IN)
    bias_col = bias.reshape(C_OUT, 1)
    gamma_col = gamma.reshape(C_OUT, 1)
    beta_col = beta.reshape(C_OUT, 1)

    out_flat = pl.pallas_call(
        snake_block_kernel,
        out_shape=jax.ShapeDtypeStruct((C_OUT, N_ELEM), jnp.float32),
        scratch_shapes=[pltpu.VMEM((K * C_IN, N_ELEM), jnp.float32)],
    )(x, w2, bias_col, gamma_col, beta_col)

    # lane-dense (C_OUT, B*L) slab -> NCL (B, C_OUT, L)
    return jnp.transpose(out_flat.reshape(C_OUT, B, L), (1, 0, 2))


# ------------------------------- reference ------------------------------------
def snake_block_ref(x, w, bias, gamma, beta):
    x_pad = jnp.concatenate([x[..., -PAD:], x, x[..., :PAD]], axis=2)
    windows = jnp.stack(
        [x_pad[:, :, k * DIL: k * DIL + L] for k in range(K)], axis=-1
    )  # (B, C_IN, L, K)
    out = jnp.einsum('oik,bilk->bol', w, windows) + bias[None, :, None]
    out = jnp.maximum(out, 0.0)
    mean = out.mean(axis=(0, 2), keepdims=True)
    var = out.var(axis=(0, 2), keepdims=True)       # biased (training mode)
    out = (out - mean) / jnp.sqrt(var + EPS)
    return out * gamma[None, :, None] + beta[None, :, None]


# --------------------------------- main ----------------------------------------
if __name__ == "__main__":
    key = jax.random.PRNGKey(0)
    kx, kw, kb, kg, kbt = jax.random.split(key, 5)

    x = jax.random.normal(kx, (B, C_IN, L), dtype=jnp.float32)
    # Conv1d weight (out, in, kernel) and bias -- deterministic synthetic init
    w = 0.1 * jax.random.normal(kw, (C_OUT, C_IN, K), dtype=jnp.float32)
    bias = 0.1 * jax.random.normal(kb, (C_OUT,), dtype=jnp.float32)
    # BatchNorm affine params
    gamma = 1.0 + 0.1 * jax.random.normal(kg, (C_OUT,), dtype=jnp.float32)
    beta = 0.1 * jax.random.normal(kbt, (C_OUT,), dtype=jnp.float32)

    out = snake_block(x, w, bias, gamma, beta)
    out = jax.block_until_ready(out)

    ref = snake_block_ref(x, w, bias, gamma, beta)
    assert out.shape == (B, C_OUT, L)
    assert jnp.allclose(out, ref, atol=1e-4, rtol=1e-4), (
        float(jnp.max(jnp.abs(out - ref))))

    print("KERNEL_OK")
</pallas_src>

<mosaic_0001>
module attributes {stable_mosaic.version = 11 : i64} {
  func.func @snake_block_kernel(%arg0: memref<2x4x16xf32, #tpu.memory_space<vmem>>, %arg1: memref<8x36xf32, #tpu.memory_space<vmem>>, %arg2: memref<8x1xf32, #tpu.memory_space<vmem>>, %arg3: memref<8x1xf32, #tpu.memory_space<vmem>>, %arg4: memref<8x1xf32, #tpu.memory_space<vmem>>, %arg5: memref<8x32xf32, #tpu.memory_space<vmem>>, %arg6: memref<36x32xf32, #tpu.memory_space<vmem>>) attributes {dimension_semantics = [], scalar_prefetch = 0 : i64, scratch_operands = 1 : i64, tpu.core_type = #tpu.core_type<tc>} {
    %c0 = arith.constant 0 : index
    %c0_0 = arith.constant 0 : index
    %c0_1 = arith.constant 0 : index
    %0 = vector.load %arg0[%c0, %c0_0, %c0_1] : memref<2x4x16xf32, #tpu.memory_space<vmem>>, vector<1x4x16xf32>
    %1 = vector.shape_cast %0 : vector<1x4x16xf32> to vector<4x16xf32>
    %2 = vector.extract_strided_slice %1 {offsets = [0, 12], sizes = [4, 4], strides = [1, 1]} : vector<4x16xf32> to vector<4x4xf32>
    %c0_2 = arith.constant 0 : index
    %c0_3 = arith.constant 0 : index
    %3 = vector.load %arg6[%c0_2, %c0_3] : memref<36x32xf32, #tpu.memory_space<vmem>>, vector<4x4xf32>
    tpu.vector_store %arg6[%c0_2, %c0_3], %2 {strides = array<i32>} : memref<36x32xf32, #tpu.memory_space<vmem>>, vector<4x4xf32>,
    %4 = vector.extract_strided_slice %1 {offsets = [0, 0], sizes = [4, 12], strides = [1, 1]} : vector<4x16xf32> to vector<4x12xf32>
    %c0_4 = arith.constant 0 : index
    %c4 = arith.constant 4 : index
    %5 = vector.load %arg6[%c0_4, %c4] : memref<36x32xf32, #tpu.memory_space<vmem>>, vector<4x12xf32>
    tpu.vector_store %arg6[%c0_4, %c4], %4 {strides = array<i32>} : memref<36x32xf32, #tpu.memory_space<vmem>>, vector<4x12xf32>,
    %6 = vector.extract_strided_slice %1 {offsets = [0, 13], sizes = [4, 3], strides = [1, 1]} : vector<4x16xf32> to vector<4x3xf32>
    %c4_5 = arith.constant 4 : index
    %c0_6 = arith.constant 0 : index
    %7 = vector.load %arg6[%c4_5, %c0_6] : memref<36x32xf32, #tpu.memory_space<vmem>>, vector<4x3xf32>
    tpu.vector_store %arg6[%c4_5, %c0_6], %6 {strides = array<i32>} : memref<36x32xf32, #tpu.memory_space<vmem>>, vector<4x3xf32>,
    %8 = vector.extract_strided_slice %1 {offsets = [0, 0], sizes = [4, 13], strides = [1, 1]} : vector<4x16xf32> to vector<4x13xf32>
    %c4_7 = arith.constant 4 : index
    %c3 = arith.constant 3 : index
    %9 = vector.load %arg6[%c4_7, %c3] : memref<36x32xf32, #tpu.memory_space<vmem>>, vector<4x13xf32>
    tpu.vector_store %arg6[%c4_7, %c3], %8 {strides = array<i32>} : memref<36x32xf32, #tpu.memory_space<vmem>>, vector<4x13xf32>,
    %10 = vector.extract_strided_slice %1 {offsets = [0, 14], sizes = [4, 2], strides = [1, 1]} : vector<4x16xf32> to vector<4x2xf32>
    %c8 = arith.constant 8 : index
    %c0_8 = arith.constant 0 : index
    %11 = vector.load %arg6[%c8, %c0_8] : memref<36x32xf32, #tpu.memory_space<vmem>>, vector<4x2xf32>
    tpu.vector_store %arg6[%c8, %c0_8], %10 {strides = array<i32>} : memref<36x32xf32, #tpu.memory_space<vmem>>, vector<4x2xf32>,
    %12 = vector.extract_strided_slice %1 {offsets = [0, 0], sizes = [4, 14], strides = [1, 1]} : vector<4x16xf32> to vector<4x14xf32>
    %c8_9 = arith.constant 8 : index
    %c2 = arith.constant 2 : index
    %13 = vector.load %arg6[%c8_9, %c2] : memref<36x32xf32, #tpu.memory_space<vmem>>, vector<4x14xf32>
    tpu.vector_store %arg6[%c8_9, %c2], %12 {strides = array<i32>} : memref<36x32xf32, #tpu.memory_space<vmem>>, vector<4x14xf32>,
    %14 = vector.extract_strided_slice %1 {offsets = [0, 15], sizes = [4, 1], strides = [1, 1]} : vector<4x16xf32> to vector<4x1xf32>
    %c12 = arith.constant 12 : index
    %c0_10 = arith.constant 0 : index
    %15 = vector.load %arg6[%c12, %c0_10] : memref<36x32xf32, #tpu.memory_space<vmem>>, vector<4x1xf32>
    tpu.vector_store %arg6[%c12, %c0_10], %14 {strides = array<i32>} : memref<36x32xf32, #tpu.memory_space<vmem>>, vector<4x1xf32>,
    %16 = vector.extract_strided_slice %1 {offsets = [0, 0], sizes = [4, 15], strides = [1, 1]} : vector<4x16xf32> to vector<4x15xf32>
    %c12_11 = arith.constant 12 : index
    %c1 = arith.constant 1 : index
    %17 = vector.load %arg6[%c12_11, %c1] : memref<36x32xf32, #tpu.memory_space<vmem>>, vector<4x15xf32>
    tpu.vector_store %arg6[%c12_11, %c1], %16 {strides = array<i32>} : memref<36x32xf32, #tpu.memory_space<vmem>>, vector<4x15xf32>,
    %c16 = arith.constant 16 : index
    %c0_12 = arith.constant 0 : index
    %18 = vector.load %arg6[%c16, %c0_12] : memref<36x32xf32, #tpu.memory_space<vmem>>, vector<4x16xf32>
    tpu.vector_store %arg6[%c16, %c0_12], %1 {strides = array<i32>} : memref<36x32xf32, #tpu.memory_space<vmem>>, vector<4x16xf32>,
    %19 = vector.extract_strided_slice %1 {offsets = [0, 1], sizes = [4, 15], strides = [1, 1]} : vector<4x16xf32> to vector<4x15xf32>
    %c20 = arith.constant 20 : index
    %c0_13 = arith.constant 0 : index
    %20 = vector.load %arg6[%c20, %c0_13] : memref<36x32xf32, #tpu.memory_space<vmem>>, vector<4x15xf32>
    tpu.vector_store %arg6[%c20, %c0_13], %19 {strides = array<i32>} : memref<36x32xf32, #tpu.memory_space<vmem>>, vector<4x15xf32>,
    %21 = vector.extract_strided_slice %1 {offsets = [0, 0], sizes = [4, 1], strides = [1, 1]} : vector<4x16xf32> to vector<4x1xf32>
    %c20_14 = arith.constant 20 : index
    %c15 = arith.constant 15 : index
    %22 = vector.load %arg6[%c20_14, %c15] : memref<36x32xf32, #tpu.memory_space<vmem>>, vector<4x1xf32>
    tpu.vector_store %arg6[%c20_14, %c15], %21 {strides = array<i32>} : memref<36x32xf32, #tpu.memory_space<vmem>>, vector<4x1xf32>,
    %23 = vector.extract_strided_slice %1 {offsets = [0, 2], sizes = [4, 14], strides = [1, 1]} : vector<4x16xf32> to vector<4x14xf32>
    %c24 = arith.constant 24 : index
    %c0_15 = arith.constant 0 : index
    %24 = vector.load %arg6[%c24, %c0_15] : memref<36x32xf32, #tpu.memory_space<vmem>>, vector<4x14xf32>
    tpu.vector_store %arg6[%c24, %c0_15], %23 {strides = array<i32>} : memref<36x32xf32, #tpu.memory_space<vmem>>, vector<4x14xf32>,
    %25 = vector.extract_strided_slice %1 {offsets = [0, 0], sizes = [4, 2], strides = [1, 1]} : vector<4x16xf32> to vector<4x2xf32>
    %c24_16 = arith.constant 24 : index
    %c14 = arith.constant 14 : index
    %26 = vector.load %arg6[%c24_16, %c14] : memref<36x32xf32, #tpu.memory_space<vmem>>, vector<4x2xf32>
    tpu.vector_store %arg6[%c24_16, %c14], %25 {strides = array<i32>} : memref<36x32xf32, #tpu.memory_space<vmem>>, vector<4x2xf32>,
    %27 = vector.extract_strided_slice %1 {offsets = [0, 3], sizes = [4, 13], strides = [1, 1]} : vector<4x16xf32> to vector<4x13xf32>
    %c28 = arith.constant 28 : index
    %c0_17 = arith.constant 0 : index
    %28 = vector.load %arg6[%c28, %c0_17] : memref<36x32xf32, #tpu.memory_space<vmem>>, vector<4x13xf32>
    tpu.vector_store %arg6[%c28, %c0_17], %27 {strides = array<i32>} : memref<36x32xf32, #tpu.memory_space<vmem>>, vector<4x13xf32>,
    %29 = vector.extract_strided_slice %1 {offsets = [0, 0], sizes = [4, 3], strides = [1, 1]} : vector<4x16xf32> to vector<4x3xf32>
    %c28_18 = arith.constant 28 : index
    %c13 = arith.constant 13 : index
    %30 = vector.load %arg6[%c28_18, %c13] : memref<36x32xf32, #tpu.memory_space<vmem>>, vector<4x3xf32>
    tpu.vector_store %arg6[%c28_18, %c13], %29 {strides = array<i32>} : memref<36x32xf32, #tpu.memory_space<vmem>>, vector<4x3xf32>,
    %31 = vector.extract_strided_slice %1 {offsets = [0, 4], sizes = [4, 12], strides = [1, 1]} : vector<4x16xf32> to vector<4x12xf32>
    %c32 = arith.constant 32 : index
    %c0_19 = arith.constant 0 : index
    %32 = vector.load %arg6[%c32, %c0_19] : memref<36x32xf32, #tpu.memory_space<vmem>>, vector<4x12xf32>
    tpu.vector_store %arg6[%c32, %c0_19], %31 {strides = array<i32>} : memref<36x32xf32, #tpu.memory_space<vmem>>, vector<4x12xf32>,
    %33 = vector.extract_strided_slice %1 {offsets = [0, 0], sizes = [4, 4], strides = [1, 1]} : vector<4x16xf32> to vector<4x4xf32>
    %c32_20 = arith.constant 32 : index
    %c12_21 = arith.constant 12 : index
    %34 = vector.load %arg6[%c32_20, %c12_21] : memref<36x32xf32, #tpu.memory_space<vmem>>, vector<4x4xf32>
    tpu.vector_store %arg6[%c32_20, %c12_21], %33 {strides = array<i32>} : memref<36x32xf32, #tpu.memory_space<vmem>>, vector<4x4xf32>,
    %c1_22 = arith.constant 1 : index
    %c0_23 = arith.constant 0 : index
    %c0_24 = arith.constant 0 : index
    %35 = vector.load %arg0[%c1_22, %c0_23, %c0_24] : memref<2x4x16xf32, #tpu.memory_space<vmem>>, vector<1x4x16xf32>
    %36 = vector.shape_cast %35 : vector<1x4x16xf32> to vector<4x16xf32>
    %37 = vector.extract_strided_slice %36 {offsets = [0, 12], sizes = [4, 4], strides = [1, 1]} : vector<4x16xf32> to vector<4x4xf32>
    %c0_25 = arith.constant 0 : index
    %c16_26 = arith.constant 16 : index
    %38 = vector.load %arg6[%c0_25, %c16_26] : memref<36x32xf32, #tpu.memory_space<vmem>>, vector<4x4xf32>
    tpu.vector_store %arg6[%c0_25, %c16_26], %37 {strides = array<i32>} : memref<36x32xf32, #tpu.memory_space<vmem>>, vector<4x4xf32>,
    %39 = vector.extract_strided_slice %36 {offsets = [0, 0], sizes = [4, 12], strides = [1, 1]} : vector<4x16xf32> to vector<4x12xf32>
    %c0_27 = arith.constant 0 : index
    %c20_28 = arith.constant 20 : index
    %40 = vector.load %arg6[%c0_27, %c20_28] : memref<36x32xf32, #tpu.memory_space<vmem>>, vector<4x12xf32>
    tpu.vector_store %arg6[%c0_27, %c20_28], %39 {strides = array<i32>} : memref<36x32xf32, #tpu.memory_space<vmem>>, vector<4x12xf32>,
    %41 = vector.extract_strided_slice %36 {offsets = [0, 13], sizes = [4, 3], strides = [1, 1]} : vector<4x16xf32> to vector<4x3xf32>
    %c4_29 = arith.constant 4 : index
    %c16_30 = arith.constant 16 : index
    %42 = vector.load %arg6[%c4_29, %c16_30] : memref<36x32xf32, #tpu.memory_space<vmem>>, vector<4x3xf32>
    tpu.vector_store %arg6[%c4_29, %c16_30], %41 {strides = array<i32>} : memref<36x32xf32, #tpu.memory_space<vmem>>, vector<4x3xf32>,
    %43 = vector.extract_strided_slice %36 {offsets = [0, 0], sizes = [4, 13], strides = [1, 1]} : vector<4x16xf32> to vector<4x13xf32>
    %c4_31 = arith.constant 4 : index
    %c19 = arith.constant 19 : index
    %44 = vector.load %arg6[%c4_31, %c19] : memref<36x32xf32, #tpu.memory_space<vmem>>, vector<4x13xf32>
    tpu.vector_store %arg6[%c4_31, %c19], %43 {strides = array<i32>} : memref<36x32xf32, #tpu.memory_space<vmem>>, vector<4x13xf32>,
    %45 = vector.extract_strided_slice %36 {offsets = [0, 14], sizes = [4, 2], strides = [1, 1]} : vector<4x16xf32> to vector<4x2xf32>
    %c8_32 = arith.constant 8 : index
    %c16_33 = arith.constant 16 : index
    %46 = vector.load %arg6[%c8_32, %c16_33] : memref<36x32xf32, #tpu.memory_space<vmem>>, vector<4x2xf32>
    tpu.vector_store %arg6[%c8_32, %c16_33], %45 {strides = array<i32>} : memref<36x32xf32, #tpu.memory_space<vmem>>, vector<4x2xf32>,
    %47 = vector.extract_strided_slice %36 {offsets = [0, 0], sizes = [4, 14], strides = [1, 1]} : vector<4x16xf32> to vector<4x14xf32>
    %c8_34 = arith.constant 8 : index
    %c18 = arith.constant 18 : index
    %48 = vector.load %arg6[%c8_34, %c18] : memref<36x32xf32, #tpu.memory_space<vmem>>, vector<4x14xf32>
    tpu.vector_store %arg6[%c8_34, %c18], %47 {strides = array<i32>} : memref<36x32xf32, #tpu.memory_space<vmem>>, vector<4x14xf32>,
    %49 = vector.extract_strided_slice %36 {offsets = [0, 15], sizes = [4, 1], strides = [1, 1]} : vector<4x16xf32> to vector<4x1xf32>
    %c12_35 = arith.constant 12 : index
    %c16_36 = arith.constant 16 : index
    %50 = vector.load %arg6[%c12_35, %c16_36] : memref<36x32xf32, #tpu.memory_space<vmem>>, vector<4x1xf32>
    tpu.vector_store %arg6[%c12_35, %c16_36], %49 {strides = array<i32>} : memref<36x32xf32, #tpu.memory_space<vmem>>, vector<4x1xf32>,
    %51 = vector.extract_strided_slice %36 {offsets = [0, 0], sizes = [4, 15], strides = [1, 1]} : vector<4x16xf32> to vector<4x15xf32>
    %c12_37 = arith.constant 12 : index
    %c17 = arith.constant 17 : index
    %52 = vector.load %arg6[%c12_37, %c17] : memref<36x32xf32, #tpu.memory_space<vmem>>, vector<4x15xf32>
    tpu.vector_store %arg6[%c12_37, %c17], %51 {strides = array<i32>} : memref<36x32xf32, #tpu.memory_space<vmem>>, vector<4x15xf32>,
    %c16_38 = arith.constant 16 : index
    %c16_39 = arith.constant 16 : index
    %53 = vector.load %arg6[%c16_38, %c16_39] : memref<36x32xf32, #tpu.memory_space<vmem>>, vector<4x16xf32>
    tpu.vector_store %arg6[%c16_38, %c16_39], %36 {strides = array<i32>} : memref<36x32xf32, #tpu.memory_space<vmem>>, vector<4x16xf32>,
    %54 = vector.extract_strided_slice %36 {offsets = [0, 1], sizes = [4, 15], strides = [1, 1]} : vector<4x16xf32> to vector<4x15xf32>
    %c20_40 = arith.constant 20 : index
    %c16_41 = arith.constant 16 : index
    %55 = vector.load %arg6[%c20_40, %c16_41] : memref<36x32xf32, #tpu.memory_space<vmem>>, vector<4x15xf32>
    tpu.vector_store %arg6[%c20_40, %c16_41], %54 {strides = array<i32>} : memref<36x32xf32, #tpu.memory_space<vmem>>, vector<4x15xf32>,
    %56 = vector.extract_strided_slice %36 {offsets = [0, 0], sizes = [4, 1], strides = [1, 1]} : vector<4x16xf32> to vector<4x1xf32>
    %c20_42 = arith.constant 20 : index
    %c31 = arith.constant 31 : index
    %57 = vector.load %arg6[%c20_42, %c31] : memref<36x32xf32, #tpu.memory_space<vmem>>, vector<4x1xf32>
    tpu.vector_store %arg6[%c20_42, %c31], %56 {strides = array<i32>} : memref<36x32xf32, #tpu.memory_space<vmem>>, vector<4x1xf32>,
    %58 = vector.extract_strided_slice %36 {offsets = [0, 2], sizes = [4, 14], strides = [1, 1]} : vector<4x16xf32> to vector<4x14xf32>
    %c24_43 = arith.constant 24 : index
    %c16_44 = arith.constant 16 : index
    %59 = vector.load %arg6[%c24_43, %c16_44] : memref<36x32xf32, #tpu.memory_space<vmem>>, vector<4x14xf32>
    tpu.vector_store %arg6[%c24_43, %c16_44], %58 {strides = array<i32>} : memref<36x32xf32, #tpu.memory_space<vmem>>, vector<4x14xf32>,
    %60 = vector.extract_strided_slice %36 {offsets = [0, 0], sizes = [4, 2], strides = [1, 1]} : vector<4x16xf32> to vector<4x2xf32>
    %c24_45 = arith.constant 24 : index
    %c30 = arith.constant 30 : index
    %61 = vector.load %arg6[%c24_45, %c30] : memref<36x32xf32, #tpu.memory_space<vmem>>, vector<4x2xf32>
    tpu.vector_store %arg6[%c24_45, %c30], %60 {strides = array<i32>} : memref<36x32xf32, #tpu.memory_space<vmem>>, vector<4x2xf32>,
    %62 = vector.extract_strided_slice %36 {offsets = [0, 3], sizes = [4, 13], strides = [1, 1]} : vector<4x16xf32> to vector<4x13xf32>
    %c28_46 = arith.constant 28 : index
    %c16_47 = arith.constant 16 : index
    %63 = vector.load %arg6[%c28_46, %c16_47] : memref<36x32xf32, #tpu.memory_space<vmem>>, vector<4x13xf32>
    tpu.vector_store %arg6[%c28_46, %c16_47], %62 {strides = array<i32>} : memref<36x32xf32, #tpu.memory_space<vmem>>, vector<4x13xf32>,
    %64 = vector.extract_strided_slice %36 {offsets = [0, 0], sizes = [4, 3], strides = [1, 1]} : vector<4x16xf32> to vector<4x3xf32>
    %c28_48 = arith.constant 28 : index
    %c29 = arith.constant 29 : index
    %65 = vector.load %arg6[%c28_48, %c29] : memref<36x32xf32, #tpu.memory_space<vmem>>, vector<4x3xf32>
    tpu.vector_store %arg6[%c28_48, %c29], %64 {strides = array<i32>} : memref<36x32xf32, #tpu.memory_space<vmem>>, vector<4x3xf32>,
    %66 = vector.extract_strided_slice %36 {offsets = [0, 4], sizes = [4, 12], strides = [1, 1]} : vector<4x16xf32> to vector<4x12xf32>
    %c32_49 = arith.constant 32 : index
    %c16_50 = arith.constant 16 : index
    %67 = vector.load %arg6[%c32_49, %c16_50] : memref<36x32xf32, #tpu.memory_space<vmem>>, vector<4x12xf32>
    tpu.vector_store %arg6[%c32_49, %c16_50], %66 {strides = array<i32>} : memref<36x32xf32, #tpu.memory_space<vmem>>, vector<4x12xf32>,
    %68 = vector.extract_strided_slice %36 {offsets = [0, 0], sizes = [4, 4], strides = [1, 1]} : vector<4x16xf32> to vector<4x4xf32>
    %c32_51 = arith.constant 32 : index
    %c28_52 = arith.constant 28 : index
    %69 = vector.load %arg6[%c32_51, %c28_52] : memref<36x32xf32, #tpu.memory_space<vmem>>, vector<4x4xf32>
    tpu.vector_store %arg6[%c32_51, %c28_52], %68 {strides = array<i32>} : memref<36x32xf32, #tpu.memory_space<vmem>>, vector<4x4xf32>,
    %c0_53 = arith.constant 0 : index
    %c0_54 = arith.constant 0 : index
    %70 = vector.load %arg1[%c0_53, %c0_54] : memref<8x36xf32, #tpu.memory_space<vmem>>, vector<8x36xf32>
    %c0_55 = arith.constant 0 : index
    %c0_56 = arith.constant 0 : index
    %71 = vector.load %arg6[%c0_55, %c0_56] : memref<36x32xf32, #tpu.memory_space<vmem>>, vector<36x32xf32>
    %cst = arith.constant dense<0.000000e+00> : vector<8x32xf32>
    %72 = tpu.matmul %70, %71, %cst {dimension_numbers = #tpu.dot_dimension_numbers<[1], [0], [0], [1], [0, 0, 1, 1], [], []>} : vector<8x36xf32>, vector<36x32xf32>, vector<8x32xf32> -> vector<8x32xf32>
    %c0_57 = arith.constant 0 : index
    %c0_58 = arith.constant 0 : index
    %73 = vector.load %arg2[%c0_57, %c0_58] : memref<8x1xf32, #tpu.memory_space<vmem>>, vector<8x1xf32>
    %74 = vector.broadcast %73 : vector<8x1xf32> to vector<8x32xf32>
    %75 = arith.addf %72, %74 : vector<8x32xf32>
    %cst_59 = arith.constant 0.000000e+00 : f32
    %76 = vector.broadcast %cst_59 : f32 to vector<8x32xf32>
    %77 = arith.maximumf %75, %76 : vector<8x32xf32>
    %cst_60 = arith.constant dense<0.000000e+00> : vector<8xf32>
    %78 = vector.multi_reduction <add>, %77, %cst_60 [1] : vector<8x32xf32> to vector<8xf32>
    %79 = vector.shape_cast %78 : vector<8xf32> to vector<8x1xf32>
    %cst_61 = arith.constant 3.125000e-02 : f32
    %80 = vector.broadcast %cst_61 : f32 to vector<8x1xf32>
    %81 = arith.mulf %79, %80 : vector<8x1xf32>
    %82 = arith.mulf %77, %77 : vector<8x32xf32>
    %cst_62 = arith.constant dense<0.000000e+00> : vector<8xf32>
    %83 = vector.multi_reduction <add>, %82, %cst_62 [1] : vector<8x32xf32> to vector<8xf32>
    %84 = vector.shape_cast %83 : vector<8xf32> to vector<8x1xf32>
    %cst_63 = arith.constant 3.125000e-02 : f32
    %85 = vector.broadcast %cst_63 : f32 to vector<8x1xf32>
    %86 = arith.mulf %84, %85 : vector<8x1xf32>
    %87 = arith.mulf %81, %81 : vector<8x1xf32>
    %88 = arith.subf %86, %87 : vector<8x1xf32>
    %cst_64 = arith.constant 0.000000e+00 : f32
    %89 = vector.broadcast %cst_64 : f32 to vector<8x1xf32>
    %90 = arith.maximumf %88, %89 : vector<8x1xf32>
    %c0_65 = arith.constant 0 : index
    %c0_66 = arith.constant 0 : index
    %91 = vector.load %arg3[%c0_65, %c0_66] : memref<8x1xf32, #tpu.memory_space<vmem>>, vector<8x1xf32>
    %cst_67 = arith.constant 9.99999974E-6 : f32
    %92 = vector.broadcast %cst_67 : f32 to vector<8x1xf32>
    %93 = arith.addf %90, %92 : vector<8x1xf32>
    %94 = math.rsqrt %93 : vector<8x1xf32>
    %95 = arith.mulf %91, %94 : vector<8x1xf32>
    %c0_68 = arith.constant 0 : index
    %c0_69 = arith.constant 0 : index
    %96 = vector.load %arg4[%c0_68, %c0_69] : memref<8x1xf32, #tpu.memory_space<vmem>>, vector<8x1xf32>
    %97 = arith.mulf %81, %95 : vector<8x1xf32>
    %98 = arith.subf %96, %97 : vector<8x1xf32>
    %99 = vector.broadcast %95 : vector<8x1xf32> to vector<8x32xf32>
    %100 = arith.mulf %77, %99 : vector<8x32xf32>
    %101 = vector.broadcast %98 : vector<8x1xf32> to vector<8x32xf32>
    %102 = arith.addf %100, %101 : vector<8x32xf32>
    %c0_70 = arith.constant 0 : index
    %c0_71 = arith.constant 0 : index
    %103 = vector.load %arg5[%c0_70, %c0_71] : memref<8x32xf32, #tpu.memory_space<vmem>>, vector<8x32xf32>
    tpu.vector_store %arg5[%c0_70, %c0_71], %102 {strides = array<i32>} : memref<8x32xf32, #tpu.memory_space<vmem>>, vector<8x32xf32>,
    return
  }
}

</mosaic_0001>

<bundles_post_ra>
// kernel: snake_block.1
= control target key start
LH: loop header
LB: loop body
LE: loop exit
PB: predicated region body
PF: predicated region fallthrough
CT: control target
= control target key end

     0   :  { %s311_s20 = smov 126   ;;  %s312_s21 = smov 124   ;;  %vm67_vm0 = vcmask 117760   ;;  %vm77_vm1 = vcmask 109568   ;;  %vm97_vm2 = vcmask 93184   ;;  %vm82_vm3 = vcmask 126064   ;;  %s410_s0 = inlined_call_operand.vmem [shape: f32[2,4,16], index: 0, kind: input, shape index: {}]   ;;  %s411_s2 = inlined_call_operand.vmem [shape: f32[8,1], index: 2, kind: input, shape index: {}]   ;;  %s412_s1 = inlined_call_operand.vmem [shape: f32[8,36], index: 1, kind: input, shape index: {}]   ;;  %s413_s3 = inlined_call_operand.vmem [shape: f32[8,1], index: 3, kind: input, shape index: {}]   ;;  %s414_s4 = inlined_call_operand.vmem [shape: f32[8,1], index: 4, kind: input, shape index: {}]   ;;  %s415_s5 = inlined_call_operand.vmem [shape: f32[8,32], index: 5, kind: output, shape index: {}]  }
   0x1   :  { %v370_v0 = vld [vmem:[%s410_s0] sm:$0xf]  ;;  %v279_v1 = vld [vmem:[%s410_s0 + $0x4] sm:$0xf]  ;;  %s313_s24 = smov 12   ;;  %s314_s25 = smov 125  }
   0x2   :  { %74 = vrot.lane.b32.xlu1 %v370_v0, %s311_s20  ;;  %94 = vrot.lane.b32.xlu0 %v370_v0, %s312_s21  ;;  %s315_s26 = smov 14   ;;  %s316_s27 = smov 28   ;;  %vm72_vm4 = vcmask 126072   ;;  %vm87_vm5 = vcmask 101376   ;;  %vm102_vm6 = vcmask 126048   ;;  %vm185_vm7 = vcmask 224384  }
   0x3   :  { %182 = vrot.lane.b32.xlu2 %v279_v1, %s313_s24  ;;  %s317_s28 = smov 13   ;;  %s318_s29 = smov 127   ;;  %vm45_vm8 = vcmask 11264   ;;  %vm62_vm9 = vcmask 125952   ;;  %vm190_vm10 = vcmask 257248   ;;  %vm92_vm11 = vcmask 126056  }
   0x4   :  { %s319_s0 = smov 15   ;;  %s320_s30 = smov 29   ;;  %63 = vst.msk [vmem:[#allocation2 + $0x10] sm:$0xf] %vm62_vm9, %v370_v0  ;;  %vm50_vm12 = vcmask 125968   ;;  %vm175_vm13 = vcmask 232576  }
   0x5   :  { %s321_s6 = smov 30   ;;  %s322_s7 = smov 114   ;;  %vm208_vm14 = vcmask 1043456   ;;  %vm165_vm15 = vcmask 240768   ;;  %vm25_vm9 = vcmask 27648   ;;  %v198_v30 = vld [vmem:[%s411_s2] sm:$0xff] }
   0x6   :  { %s323_s8 = smov 113   ;;  %s324_s9 = smov 2   ;;  %v336_v31 = vmov 0   ;;  %v192_v41 = vld [vmem:[%s412_s1] sm:$0xff] }
   0x7   :  { %s325_s10 = smov 16   ;;  %s326_s11 = smov 1   ;;  %308 = vset.pattern.permute.xlu0 %v336_v31  ;;  %v246_v63 = vld [vmem:[%s413_s3] sm:$0xff] }
   0x8   :  { %s327_s12 = smov 31   ;;  %s328_s13 = smov 115  }
   0x9   :  { %s329_s14 = smov 116   ;;  %s330_s15 = smov 4  }
   0xa   :  { %84 = vrot.lane.b32.xlu1 %v370_v0, %s314_s25  ;;  %99 = vrot.lane.b32.xlu0 %v370_v0, %s313_s24  ;;  %s331_s16 = smov 3   ;;  %s332_s17 = smov 17  }
   0xb   :  { %79 = vrot.lane.b32.xlu2 %v370_v0, %s315_s26  ;;  %s333_s18 = smov 18   ;;  %s334_s19 = smov 20  }
   0xc   :  { %s335_s20 = smov 19  }
  0x12   :  { %187 = vrot.lane.b32.xlu1 %v279_v1, %s316_s27  ;;  %89 = vrot.lane.b32.xlu0 %v370_v0, %s317_s28 }
  0x13   :  { %64 = vrot.lane.b32.xlu2 %v370_v0, %s318_s29 }
  0x1a   :  { %172 = vrot.lane.b32.xlu1 %v279_v1, %s317_s28  ;;  %162 = vrot.lane.b32.xlu0 %v279_v1, %s315_s26 }
  0x1b   :  { %69 = vrot.lane.b32.xlu2 %v370_v0, %s319_s0 }
  0x22   :  { %177 = vrot.lane.b32.xlu1 %v279_v1, %s320_s30  ;;  %167 = vrot.lane.b32.xlu0 %v279_v1, %s321_s6 }
  0x23   :  { %42 = vrot.lane.b32.xlu2 %v370_v0, %s322_s7 }
  0x2a   :  { %152 = vrot.lane.b32.xlu1 %v279_v1, %s319_s0  ;;  %52 = vrot.lane.b32.xlu0 %v370_v0, %s323_s8 }
  0x2b   :  { %47 = vrot.lane.b32.xlu2 %v370_v0, %s324_s9 }
  0x32   :  { %147 = vrot.lane.b32.xlu1 %v279_v1, %s325_s10  ;;  %57 = vrot.lane.b32.xlu0 %v370_v0, %s326_s11 }
  0x33   :  { %157 = vrot.lane.b32.xlu2 %v279_v1, %s327_s12 }
  0x3a   :  { %32 = vrot.lane.b32.xlu1 %v370_v0, %s328_s13  ;;  %22 = vrot.lane.b32.xlu0 %v370_v0, %s329_s14 }
  0x3b   :  { %127 = vrot.lane.b32.xlu2 %v279_v1, %s324_s9 }
  0x42   :  { %27 = vrot.lane.b32.xlu1 %v370_v0, %s330_s15  ;;  %137 = vrot.lane.b32.xlu0 %v279_v1, %s326_s11 }
  0x43   :  { %37 = vrot.lane.b32.xlu2 %v370_v0, %s331_s16 }
  0x4a   :  { %142 = vrot.lane.b32.xlu1 %v279_v1, %s332_s17  ;;  %132 = vrot.lane.b32.xlu0 %v279_v1, %s333_s18 }
  0x4b   :  { %107 = vrot.lane.b32.xlu2 %v279_v1, %s330_s15 }
  0x52   :  { %117 = vrot.lane.b32.xlu0 %v279_v1, %s331_s16  ;;  %112 = vrot.lane.b32.xlu1 %v279_v1, %s334_s19 }
  0x53   :  { %122 = vrot.lane.b32.xlu2 %v279_v1, %s335_s20 }
  0x5a   :  { %201 = vperm.xlu0 %308, %v198_v30  }
  0x5d   :  { %v183_v2 = vpop.permute.xlu2 %182 }
  0x65   :  { %v80_v3 = vpop.permute.xlu2 %79 }
  0x6d   :  { %v65_v4 = vpop.permute.xlu2 %64 }
  0x6e   :  { %68 = vst.msk [vmem:[#allocation2 + $0x14] sm:$0xf] %vm67_vm0, %v65_v4  ;;  %vm180_vm0 = vcmask 257256   ;;  %v259_v4 = vld [vmem:[%s414_s4] sm:$0xff] }
  0x74   :  { %v75_v5 = vpop.permute.xlu1 %74  ;;  %v95_v6 = vpop.permute.xlu0 %94 }
  0x75   :  { %78 = vst.msk [vmem:[#allocation2 + $0x18] sm:$0xf] %vm77_vm1, %v75_v5  ;;  %v70_v7 = vpop.permute.xlu2 %69  ;;  %vm170_vm1 = vcmask 257264  }
  0x76   :  { %98 = vst.msk [vmem:[#allocation2 + $0x20] sm:$0xf] %vm97_vm2, %v95_v6  ;;  %vm130_vm2 = vcmask 142464  }
  0x77   :  { %83 = vst.msk [vmem:[#allocation2 + $0x18] sm:$0xf] %vm82_vm3, %v80_v3  ;;  %vm155_vm3 = vcmask 248960  }
  0x78   :  { %73 = vst.msk [vmem:[#allocation2 + $0x14] sm:$0xf] %vm72_vm4, %v70_v7  ;;  %vm55_vm4 = vcmask 3072  }
  0x7c   :  { %v85_v8 = vpop.permute.xlu1 %84  ;;  %v100_v9 = vpop.permute.xlu0 %99 }
  0x7d   :  { %88 = vst.msk [vmem:[#allocation2 + $0x1c] sm:$0xf] %vm87_vm5, %v85_v8  ;;  %v43_v10 = vpop.permute.xlu2 %42  ;;  %vm160_vm5 = vcmask 257272  }
  0x7e   :  { %103 = vst.msk [vmem:[#allocation2 + $0x20] sm:$0xf] %vm102_vm6, %v100_v9  ;;  %vm150_vm6 = vcmask 257152  }
  0x7f   :  { %186 = vst.msk [vmem:[#allocation2 + $0x20] sm:$0xf] %vm185_vm7, %v183_v2  ;;  %vm60_vm7 = vcmask 125960  }
  0x80   :  { %46 = vst.msk [vmem:[#allocation2 + $0x8] sm:$0xf] %vm45_vm8, %v43_v10  ;;  %vm35_vm8 = vcmask 19456  }
  0x84   :  { %v188_v11 = vpop.permute.xlu1 %187  ;;  %v90_v12 = vpop.permute.xlu0 %89 }
  0x85   :  { %191 = vst.msk [vmem:[#allocation2 + $0x20] sm:$0xf] %vm190_vm10, %v188_v11  ;;  %v48_v13 = vpop.permute.xlu2 %47  ;;  %vm40_vm10 = vcmask 125976  }
  0x86   :  { %93 = vst.msk [vmem:[#allocation2 + $0x1c] sm:$0xf] %vm92_vm11, %v90_v12  ;;  %vm30_vm11 = vcmask 125984  }
  0x87   :  { %51 = vst.msk [vmem:[#allocation2 + $0x8] sm:$0xf] %vm50_vm12, %v48_v13  ;;  %vm140_vm12 = vcmask 134272  }
  0x8c   :  { %v173_v14 = vpop.permute.xlu1 %172  ;;  %v163_v15 = vpop.permute.xlu0 %162  ;;  %v197_v16 = vld [vmem:[#allocation2 + $0x20] sm:$0xf] }
  0x8d   :  { %176 = vst.msk [vmem:[#allocation2 + $0x1c] sm:$0xf] %vm175_vm13, %v173_v14  ;;  %280 = vmatpush.msk.msra.mxu0 %vm208_vm14, %v197_v16  ;;  %v158_v17 = vpop.permute.xlu2 %157  ;;  %vm110_vm13 = vcmask 158848   ;;  %vm145_vm14 = vcmask 257160  }
  0x8e   :  { %166 = vst.msk [vmem:[#allocation2 + $0x18] sm:$0xf] %vm165_vm15, %v163_v15  ;;  %vm135_vm15 = vcmask 257168  }
  0x94   :  { %v178_v18 = vpop.permute.xlu1 %177  ;;  %v168_v19 = vpop.permute.xlu0 %167 }
  0x95   :  { %181 = vst.msk [vmem:[#allocation2 + $0x1c] sm:$0xf] %vm180_vm0, %v178_v18  ;;  %v128_v20 = vpop.permute.xlu2 %127  ;;  %vm120_vm0 = vcmask 150656  }
  0x96   :  { %171 = vst.msk [vmem:[#allocation2 + $0x18] sm:$0xf] %vm170_vm1, %v168_v19  ;;  %vm125_vm1 = vcmask 257176  }
  0x97   :  { %131 = vst.msk [vmem:[#allocation2 + $0x8] sm:$0xf] %vm130_vm2, %v128_v20  ;;  %vm115_vm2 = vcmask 257184  }
  0x9c   :  { %v153_v21 = vpop.permute.xlu1 %152  ;;  %v53_v22 = vpop.permute.xlu0 %52 }
  0x9d   :  { %156 = vst.msk [vmem:[#allocation2 + $0x14] sm:$0xf] %vm155_vm3, %v153_v21  ;;  %v196_v23 = vld [vmem:[#allocation2 + $0x18] sm:$0xff]  ;;  %v38_v26 = vpop.permute.xlu2 %37  ;;  %vm204_vm3 = vcmask 293888  }
  0x9e   :  { %56 = vst.msk [vmem:[#allocation2 + $0xc] sm:$0xf] %vm55_vm4, %v53_v22  ;;  %224 = vmatpush.msra.mxu0 %v196_v23  ;;  %vm233_vm4 = vcmask 261120  }
  0x9f   :  { %161 = vst.msk [vmem:[#allocation2 + $0x14] sm:$0xf] %vm160_vm5, %v158_v17 }
  0xa4   :  { %v148_v24 = vpop.permute.xlu1 %147  ;;  %v58_v25 = vpop.permute.xlu0 %57 }
  0xa5   :  { %151 = vst.msk [vmem:[#allocation2 + $0x10] sm:$0xf] %vm150_vm6, %v148_v24  ;;  %v108_v32 = vpop.permute.xlu2 %107 }
  0xa6   :  { %61 = vst.msk [vmem:[#allocation2 + $0xc] sm:$0xf] %vm60_vm7, %v58_v25 }
  0xac   :  { %v33_v27 = vpop.permute.xlu1 %32  ;;  %v23_v28 = vpop.permute.xlu0 %22  ;;  %v195_v29 = vld [vmem:[#allocation2 + $0x10] sm:$0xff] }
  0xad   :  { %36 = vst.msk [vmem:[#allocation2 + $0x4] sm:$0xf] %vm35_vm8, %v33_v27  ;;  %225 = vmatpush.msra.mxu0 %v195_v29  ;;  %v123_v37 = vpop.permute.xlu2 %122 }
  0xae   :  { %26 = vst.msk [vmem:[#allocation2] sm:$0xf] %vm25_vm9, %v23_v28 }
  0xaf   :  { %41 = vst.msk [vmem:[#allocation2 + $0x4] sm:$0xf] %vm40_vm10, %v38_v26 }
  0xb4   :  { %v28_v33 = vpop.permute.xlu1 %27  ;;  %v138_v34 = vpop.permute.xlu0 %137 }
  0xb5   :  { %31 = vst.msk [vmem:[#allocation2] sm:$0xf] %vm30_vm11, %v28_v33 }
  0xb6   :  { %141 = vst.msk [vmem:[#allocation2 + $0xc] sm:$0xf] %vm140_vm12, %v138_v34 }
  0xb7   :  { %111 = vst.msk [vmem:[#allocation2] sm:$0xf] %vm110_vm13, %v108_v32 }
  0xbc   :  { %v143_v35 = vpop.permute.xlu1 %142  ;;  %v133_v36 = vpop.permute.xlu0 %132 }
  0xbd   :  { %146 = vst.msk [vmem:[#allocation2 + $0xc] sm:$0xf] %vm145_vm14, %v143_v35 }
  0xbe   :  { %136 = vst.msk [vmem:[#allocation2 + $0x8] sm:$0xf] %vm135_vm15, %v133_v36 }
  0xc4   :  { %v118_v38 = vpop.permute.xlu0 %117  ;;  %v113_v39 = vpop.permute.xlu1 %112 }
  0xc5   :  { %121 = vst.msk [vmem:[#allocation2 + $0x4] sm:$0xf] %vm120_vm0, %v118_v38  ;;  %v194_v40 = vld [vmem:[#allocation2 + $0x8] sm:$0xff] }
  0xc6   :  { %126 = vst.msk [vmem:[#allocation2 + $0x4] sm:$0xf] %vm125_vm1, %v123_v37  ;;  %226 = vmatpush.msra.mxu0 %v194_v40 }
  0xc7   :  { %116 = vst.msk [vmem:[#allocation2] sm:$0xf] %vm115_vm2, %v113_v39 }
  0xcc   :  { %v202_v43 = vpop.permute.xlu0 %201 }
  0xce   :  { %v193_v42 = vld [vmem:[#allocation2] sm:$0xff] }
  0xcf   :  { %227 = vmatpush.msra.mxu0 %v193_v42 }
  0xd0   :  { %281 = vmatmul.msk.f32.vlgmr.msra.gmra.mxu0 %vm204_vm3, %v192_v41 }
 0x14d   :  { %v229_v44 = vpop.f32.mrf.mxu0 }
 0x14e   :  { %v230_v45 = vadd.f32 %v229_v44, %v202_v43 }
 0x150   :  { %v232_v46 = vmax.f32 %v230_v45, 0.0 }
 0x152   :  { %v234_v47 = vsel %vm233_vm4, %v232_v46, 0.0  ;;  %v238_v48 = vmul.f32 %v232_v46, %v232_v46 }
 0x153   :  { %235 = vadd.xlane.f32.xlu1 %v234_v47 }
 0x154   :  { %v239_v49 = vsel %vm233_vm4, %v238_v48, 0.0 }
 0x155   :  { %240 = vadd.xlane.f32.xlu2 %v239_v49 }
 0x1c6   :  { %v236_v50 = vpop.xlane.xlu1 %235 }
 0x1c7   :  { %v237_v51 = vmul.f32 0.03125, %v236_v50 }
 0x1c8   :  { %v241_v52 = vpop.xlane.xlu2 %240 }
 0x1c9   :  { %v243_v53 = vmul.f32 %v237_v51, %v237_v51  ;;  %v242_v54 = vmul.f32 0.03125, %v241_v52 }
 0x1cb   :  { %v244_v55 = vsub.f32 %v242_v54, %v243_v53 }
 0x1cd   :  { %v245_v56 = vmax.f32 %v244_v55, 0.0 }
 0x1cf   :  { %v247_v57 = vadd.f32 1e-05, %v245_v56 }
 0x1d1   :  { %309 = vrsqrt.f32 %v247_v57  ;;  %vm254_vm6 = vweird.f32 %v247_v57 }
 0x1d7   :  { %v310_v58 = vpop.eup %309 }
 0x1d8   :  { %v249_v59 = vmul.f32 %v310_v58, %v247_v57  ;;  %vm255_vm5 = vweird.f32 %v310_v58 }
 0x1d9   :  { %vm256_vm7 = vmor %vm254_vm6, %vm255_vm5 }
 0x1da   :  { %v250_v60 = vmul.f32 %v310_v58, %v249_v59 }
 0x1dc   :  { %v251_v61 = vmul.f32 0.5, %v250_v60 }
 0x1de   :  { %v252_v62 = vsub.f32 1.5, %v251_v61 }
 0x1e0   :  { %v253_v0 = vmul.f32 %v310_v58, %v252_v62 }
 0x1e2   :  { %v257_v1 = vsel %vm256_vm7, %v310_v58, %v253_v0 }
 0x1e3   :  { %v258_v2 = vmul.f32 %v257_v1, %v246_v63 }
 0x1e5   :  { %264 = vperm.xlu0 %308, %v258_v2   ;;  %v260_v3 = vmul.f32 %v258_v2, %v237_v51 }
 0x1e7   :  { %v261_v5 = vsub.f32 %v259_v4, %v260_v3 }
 0x1ed   :  { %270 = vperm.xlu0 %308, %v261_v5  }
 0x257   :  { %v265_v6 = vpop.permute.xlu0 %264 }
 0x258   :  { %v267_v7 = vmul.f32 %v265_v6, %v232_v46 }
 0x25f   :  { %v271_v8 = vpop.permute.xlu0 %270 }
 0x260   :  { %v273_v9 = vadd.f32 %v271_v8, %v267_v7 }
 0x262   :  { %274 = vst.msk [vmem:[%s415_s5] sm:$0xff] %vm233_vm4, %v273_v9 }

</bundles_post_ra>
